<compile_context>
chip_gen: v5e
topology: v5e:2x2
jax: 0.10.0
libtpu: 0.0.40
codegen_flags: <defaults>
</compile_context>

<pallas_src>
from enum import Enum
from typing import Callable, Optional

import jax
import jax.numpy as jnp
from jax.experimental import pallas as pl
from jax.experimental.pallas import tpu as pltpu


# ---------------------------------------------------------------------------
# Pallas kernel (elementwise ReLU on a lane-dense VMEM tile)
# ---------------------------------------------------------------------------
def _relu_kernel(x_ref, o_ref):
    o_ref[...] = jnp.maximum(x_ref[...], 0)


# ---------------------------------------------------------------------------
# Wrapper configuration
# ---------------------------------------------------------------------------
_LANE_WIDTHS = (512, 256, 128)          # lane-dense slab widths (unmasked vst)
_SMALL_FALLBACK_BYTES = 256 * 1024      # below this, XLA fused ReLU wins (launch cost)
_MIN_GRID_STEPS = 4                     # >=2 steps per TC on v7x + pipelining overlap

_gen_cfg_cache = None


def _generation_config():
    """(target_block_bytes, vmem_limit_bytes_or_None) per TPU generation."""
    global _gen_cfg_cache
    if _gen_cfg_cache is None:
        try:
            kind = jax.devices()[0].device_kind.lower()
        except Exception:  # pragma: no cover - defensive
            kind = ""
        if "v7" in kind:
            # 64 MiB physical VMEM: 6 MiB blocks, raise scoped limit to cover 4 copies.
            cfg = (6 * 1024 * 1024, 48 * 1024 * 1024)
        elif "v6" in kind:
            # 128 MiB physical VMEM: plenty of headroom.
            cfg = (6 * 1024 * 1024, 64 * 1024 * 1024)
        elif "v5" in kind:
            # 16 MiB scoped default: 2 MiB x 2 bufs x (in+out) = 8 MiB fits.
            cfg = (2 * 1024 * 1024, None)
        else:
            cfg = (2 * 1024 * 1024, None)  # unknown/older generation: conservative
        _gen_cfg_cache = cfg
    return _gen_cfg_cache


def _round_up(n: int, m: int) -> int:
    return ((n + m - 1) // m) * m


# ---------------------------------------------------------------------------
# ReLU: lane-dense reslab + row tiling + software pipelining
# ---------------------------------------------------------------------------
def relu(x: jax.Array, *, donate: bool = False,
         small_fallback_bytes: int = _SMALL_FALLBACK_BYTES) -> jax.Array:
    """Pallas-backed nn.ReLU (the Block's default activation).

    donate=True adds input_output_aliases={0: 0} so the output reuses the
    input HBM buffer when the caller donates x (halves HBM footprint).
    """
    total = int(x.size)
    if total == 0:
        return x
    dtype = x.dtype
    itemsize = jnp.dtype(dtype).itemsize
    total_bytes = total * itemsize

    # Small-input fast path: pallas_call launch overhead + fusion barrier would
    # dominate; XLA's fused elementwise ReLU is strictly faster here.
    if total_bytes < small_fallback_bytes:
        return jnp.maximum(x, 0)

    # Lane-dense slab width: largest of {512, 256, 128} that divides the total,
    # so the reshape is free (no pad/concatenate, no tail slice).
    cols = next((c for c in _LANE_WIDTHS if total % c == 0), None)
    if cols is None:
        # TODO(synk): ragged totals (not a multiple of 128) fall back to XLA's
        # fused ReLU; padding into a slab would cost ~2x extra HBM traffic.
        return jnp.maximum(x, 0)

    rows = total // cols
    # Sublane multiple for the second-to-last block dim: 8 (f32), 16 (bf16), 32 (int8).
    sublane = max(8, 32 // itemsize)
    target_block_bytes, vmem_limit = _generation_config()

    if rows <= sublane:
        tr = rows  # single full-extent block (block dim == array dim is allowed)
    else:
        # Size the row tile to ~target_block_bytes, rounded to a sublane multiple.
        max_tr = max(sublane,
                     (target_block_bytes // (cols * itemsize)) // sublane * sublane)
        # Guarantee >= _MIN_GRID_STEPS grid steps on medium tensors (megacore + overlap).
        if rows >= _MIN_GRID_STEPS * sublane:
            cap = max(sublane, (rows // _MIN_GRID_STEPS) // sublane * sublane)
            max_tr = min(max_tr, cap)
        tr = min(max_tr, _round_up(rows, sublane))
        if tr >= rows:
            tr = rows  # single block: use the exact array extent

    grid_rows = pl.cdiv(rows, tr)   # partial last block handled by Pallas masking
    x2d = x.reshape(rows, cols)     # free: total == rows * cols

    call_kwargs = {}
    if donate:
        call_kwargs["input_output_aliases"] = {0: 0}

    out2d = pl.pallas_call(
        _relu_kernel,
        out_shape=jax.ShapeDtypeStruct((rows, cols), dtype),
        grid=(grid_rows,),
        in_specs=[pl.BlockSpec((tr, cols), lambda i: (i, 0))],
        out_specs=pl.BlockSpec((tr, cols), lambda i: (i, 0)),
        compiler_params=pltpu.CompilerParams(
            dimension_semantics=("parallel",),   # independent row tiles -> megacore
            vmem_limit_bytes=vmem_limit,
        ),
        cost_estimate=pl.CostEstimate(
            flops=total, transcendentals=0, bytes_accessed=2 * total_bytes),
        **call_kwargs,
    )(x2d)

    return out2d.reshape(x.shape)


# ---------------------------------------------------------------------------
# Module-level wrappers mirroring the PyTorch classes
# ---------------------------------------------------------------------------
class Identity:
    """Equivalent of the PyTorch Identity module: pure passthrough (no HBM traffic)."""

    def __call__(self, x: jax.Array) -> jax.Array:
        return x

    forward = __call__


class Block:
    """JAX/Pallas mirror of the abstract Block base class."""

    class Type(Enum):
        INPUT = 0
        LINEAR = 1
        CONV = 2
        JOIN = 3
        OUTPUT = 4
        FLATTEN = 5

    def __init__(self, b_type: "Block.Type",
                 activation_function: Optional[Callable] = relu):
        self.b_type = b_type
        # default activation is ReLU; fall back to Identity when None (as in PyTorch)
        self.activation_function = (
            activation_function if activation_function is not None else Identity()
        )
        self.forward_connections = dict()

    def apply_activation(self, x: jax.Array) -> jax.Array:
        """The only concrete compute a base Block carries: its activation."""
        return self.activation_function(x)

    def forward(self, x: jax.Array):
        # TODO(synk): Block.forward is abstract in the reference module
        # (raises NotImplementedError); concrete children (Linear/Conv/...) define it.
        raise NotImplementedError("This method must be implemented in the Child Block")


# ---------------------------------------------------------------------------
# Demo / correctness check
# ---------------------------------------------------------------------------
if __name__ == "__main__":
    key = jax.random.PRNGKey(0)

    # Small NCHW input consistent with a conv-style Block: batch=2, C=4, H=W=16.
    x = jax.random.normal(key, (2, 4, 16, 16), dtype=jnp.float32)

    block = Block(Block.Type.INPUT)           # default activation: ReLU
    y_relu = jax.block_until_ready(block.apply_activation(x))
    ident_block = Block(Block.Type.INPUT, activation_function=None)  # Identity
    y_id = jax.block_until_ready(ident_block.apply_activation(x))

    assert y_relu.shape == x.shape and y_relu.dtype == x.dtype
    assert jnp.allclose(y_relu, jnp.maximum(x, 0.0))
    assert jnp.allclose(y_id, x)

    # Force the Pallas path on the small tensor (single full-extent block).
    y_small_pallas = jax.block_until_ready(relu(x, small_fallback_bytes=0))
    assert jnp.allclose(y_small_pallas, jnp.maximum(x, 0.0))

    # Modest tensor exercising the multi-step pipelined grid (>= 4 steps).
    x_med = jax.random.normal(key, (4, 8, 32, 32), dtype=jnp.float32)
    y_med = jax.block_until_ready(relu(x_med, small_fallback_bytes=0))
    assert y_med.shape == x_med.shape and y_med.dtype == x_med.dtype
    assert jnp.allclose(y_med, jnp.maximum(x_med, 0.0))

    # Ragged (non-multiple-of-128) total: takes the fused-XLA fallback path.
    x_rag = jax.random.normal(key, (3, 5, 33, 17), dtype=jnp.float32)
    y_rag = jax.block_until_ready(relu(x_rag))
    assert y_rag.shape == x_rag.shape
    assert jnp.allclose(y_rag, jnp.maximum(x_rag, 0.0))

    print("KERNEL_OK")
</pallas_src>

<mosaic_0001>
module attributes {stable_mosaic.version = 11 : i64} {
  func.func @_relu_kernel(%arg0: i32, %arg1: memref<4x512xf32, #tpu.memory_space<vmem>>, %arg2: memref<4x512xf32, #tpu.memory_space<vmem>>) attributes {dimension_semantics = [#tpu.dimension_semantics<parallel>], iteration_bounds = array<i64: 1>, scalar_prefetch = 0 : i64, scratch_operands = 0 : i64, tpu.core_type = #tpu.core_type<tc>, window_params = [{transform_indices = @transform_0, window_bounds = array<i64: 4, 512>}, {transform_indices = @transform_1, window_bounds = array<i64: 4, 512>}]} {
    %c0 = arith.constant 0 : index
    %c0_0 = arith.constant 0 : index
    %0 = vector.load %arg1[%c0, %c0_0] : memref<4x512xf32, #tpu.memory_space<vmem>>, vector<4x512xf32>
    %cst = arith.constant 0.000000e+00 : f32
    %1 = vector.broadcast %cst : f32 to vector<4x512xf32>
    %2 = arith.maximumf %0, %1 : vector<4x512xf32>
    %c0_1 = arith.constant 0 : index
    %c0_2 = arith.constant 0 : index
    %3 = vector.load %arg2[%c0_1, %c0_2] : memref<4x512xf32, #tpu.memory_space<vmem>>, vector<4x512xf32>
    tpu.vector_store %arg2[%c0_1, %c0_2], %2 {strides = array<i32>} : memref<4x512xf32, #tpu.memory_space<vmem>>, vector<4x512xf32>,
    return
  }
  func.func @transform_0(%arg0: i32) -> (i32, i32) {
    %c0_i32 = arith.constant 0 : i32
    %c0_i32_0 = arith.constant 0 : i32
    return %arg0, %c0_i32 : i32, i32
  }
  func.func @transform_1(%arg0: i32) -> (i32, i32) {
    %c0_i32 = arith.constant 0 : i32
    %c0_i32_0 = arith.constant 0 : i32
    return %arg0, %c0_i32 : i32, i32
  }
}

</mosaic_0001>

<bundles_post_ra>
// kernel: tpu_custom_call.1
= control target key start
LH: loop header
LB: loop body
LE: loop exit
PB: predicated region body
PF: predicated region fallthrough
CT: control target
= control target key end

     0   :  { %6 = vsyncpa [#allocation3], 0  ;;  %s118_s0 = inlined_call_operand.hbm [shape: f32[4,512], index: 0, kind: input, shape index: {}]   ;;  %s119_s1 = inlined_call_operand.hbm [shape: f32[4,512], index: 1, kind: output, shape index: {}]  }
   0x1   :  { %7 = vsyncpa [#allocation4], 0  ;;  %s13_s8 = sshll.u32 %s118_s0, 4  ;;  %s100_s9 = smov [#allocation2]   ;;  %s14_s8 = int_to_ptr.hbm [resolvable:$true] %s13_s8 }
   0x2   :  { %s15_s10 = sshll.u32 %s100_s9, 4  ;;  %s16_s10 = int_to_ptr.vmem [resolvable:$true] %s15_s10 }
   0x3   :  { %18 = dma.hbm_to_vmem [thread:$0]  %s14_s8, 256, %s16_s10, [#allocation3]  }
   0x4   :  { %96 = dma.done.wait [#allocation3], 256  }
   0x5   :  { %97 = vsyncadd [#allocation3], 4294967040  ;;  %s101_s11 = smov [#allocation5]   ;;  %s36_s15 = sshll.u32 %s119_s1, 4  ;;  %v23_v0 = vld [vmem:[#allocation2] sm:$0xff]  ;;  %v24_v1 = vld [vmem:[#allocation2 + $0x8] sm:$0xff]  ;;  %s37_s15 = int_to_ptr.hbm [resolvable:$true] %s36_s15 }
   0x6   :  { %s34_s12 = sshll.u32 %s101_s11, 4  ;;  %v25_v2 = vmax.f32 %v23_v0, 0.0  ;;  %v26_v3 = vmax.f32 %v24_v1, 0.0  ;;  %s35_s12 = int_to_ptr.vmem [resolvable:$true] %s34_s12 }
   0x8   :  { %27 = vst [vmem:[#allocation5] sm:$0xff] %v25_v2 }
   0x9   :  { %28 = vst [vmem:[#allocation5 + $0x8] sm:$0xff] %v26_v3 }
   0xa   :  { %39 = dma.vmem_to_hbm [thread:$0]  %s35_s12, 256, %s37_s15, [#allocation4]  }
   0xb   :  { %98 = dma.done.wait [#allocation4], 256  }
   0xc   :  { %99 = vsyncadd [#allocation4], 4294967040 }
   0xd   :  { %44 = vsyncpa [#allocation3], 1 }
   0xe   :  { %45 = vsyncpa [#allocation4], 1 }

</bundles_post_ra>
